<compile_context>
chip_gen: v7x
topology: tpu7x:2x2x1
jax: 0.10.0
libtpu: 0.0.40
codegen_flags: <defaults>
</compile_context>

<pallas_src>
import functools

import jax
import jax.numpy as jnp
from jax.experimental import pallas as pl
from jax.experimental.pallas import tpu as pltpu

LANES = 128
SUBLANES = 8


def _round_up(x, m):
    return ((x + m - 1) // m) * m


def dqn_kernel(x_ref, w1_ref, b1_ref, w2_ref, b2_ref, w3_ref, b3_ref, out_ref):
    # bf16 MXU operands, f32 accumulation.  The .astype is a no-op if the caller
    # already feeds bf16 states (halves x DMA, skips the per-tile VPU cast).
    # TODO(synk): bf16 activations trade ~0.5% relative error for bandwidth;
    # keep x/h in f32 (weights-only bf16) if action-value gaps are very small.
    x = x_ref[...].astype(jnp.bfloat16)
    h1 = jnp.dot(x, w1_ref[...], preferred_element_type=jnp.float32) + b1_ref[...]
    h1 = jnp.maximum(h1, 0.0).astype(jnp.bfloat16)                      # ReLU
    h2 = jnp.dot(h1, w2_ref[...], preferred_element_type=jnp.float32) + b2_ref[...]
    h2 = jnp.maximum(h2, 0.0).astype(jnp.bfloat16)                      # ReLU
    q = jnp.dot(h2, w3_ref[...], preferred_element_type=jnp.float32) + b3_ref[...]
    out_ref[...] = q.astype(out_ref.dtype)       # lane-dense bf16 store


def prepare_params(params):
    """One-time parameter prep, hoisted out of the per-step forward.

    Returns (prepared_pytree, n_actions).  Weights become bf16 (halved weight
    DMA, native MXU operand dtype), the output layer is lane-padded to a
    multiple of 128 so the kernel's store is lane-dense, biases become (1, N)
    f32 rows for clean sublane broadcast.
    """
    n_actions = params["w3"].shape[1]
    n_out = _round_up(max(n_actions, LANES), LANES)
    w3 = jnp.pad(params["w3"], ((0, 0), (0, n_out - n_actions)))
    b3 = jnp.pad(params["b3"], (0, n_out - n_actions))
    prep = {
        "w1": params["w1"].astype(jnp.bfloat16),
        "b1": params["b1"].reshape(1, -1).astype(jnp.float32),
        "w2": params["w2"].astype(jnp.bfloat16),
        "b2": params["b2"].reshape(1, -1).astype(jnp.float32),
        "w3": w3.astype(jnp.bfloat16),
        "b3": b3.reshape(1, -1).astype(jnp.float32),
    }
    return prep, n_actions


@functools.partial(jax.jit, static_argnames=("n_actions", "tile_b"))
def dqn_forward(state, prep, *, n_actions, tile_b=1024):
    """Forward pass of DeepQNetwork via one batch-gridded fused Pallas kernel.

    state: (B, in_dim) f32 or bf16.   prep: output of prepare_params().
    Returns (B, n_actions) float32 Q-values.
    """
    B, in_dim = state.shape
    fc1 = prep["w1"].shape[1]
    fc2 = prep["w2"].shape[1]
    n_out = prep["w3"].shape[1]

    # --- batch tiling: big tiles, >=2 grid steps when B permits, ragged tail ---
    b8 = _round_up(B, SUBLANES)
    tb = min(tile_b, b8)
    if b8 >= 2 * SUBLANES:            # guarantee a >=2-step grid for 2-TC v7x
        tb = min(tb, _round_up(pl.cdiv(b8, 2), SUBLANES))
    tb = _round_up(tb, SUBLANES)
    grid = (pl.cdiv(B, tb),)          # Pallas masks the ragged trailing block

    x_bytes = state.dtype.itemsize

    # --- explicit VMEM budget (48 MiB cap: headroom inside v7x's 64 MiB/TC) ----
    weight_bytes = 2 * (in_dim * fc1 + fc1 * fc2 + fc2 * n_out) * 2    # bf16 x 2 bufs
    bias_bytes = 2 * (fc1 + fc2 + n_out) * 4
    io_bytes = 2 * tb * (in_dim * x_bytes + n_out * 2)                 # x / bf16 out, x2 bufs
    act_bytes = tb * (fc1 + fc2) * 4 + tb * max(fc1, fc2) * 2          # h1/h2 staging
    est = weight_bytes + bias_bytes + io_bytes + act_bytes
    vmem_limit = int(min(48 << 20, max(32 << 20, 2 * est)))

    # --- advisory cost estimate: helps XLA schedule around the us-scale call ---
    flops = 2 * B * (in_dim * fc1 + fc1 * fc2 + fc2 * n_out)
    bytes_accessed = (
        B * in_dim * x_bytes + B * n_out * 2                           # x read + out write
        + (in_dim * fc1 + fc1 * fc2 + fc2 * n_out) * 2                 # bf16 weights
        + (fc1 + fc2 + n_out) * 4                                      # f32 biases
    )

    # Weights/biases: constant index_map -> one block, VMEM-resident across the
    # grid while batch tiles stream through.
    # NOTE: for much larger fc dims on v7x, pipeline_mode=pl.Buffered(1) on the
    # weight specs drops their double-buffer; omitted here (irrelevant at fc=32)
    # and the VMEM estimate above conservatively counts 2x weight buffers.
    full = lambda i: (0, 0)
    out = pl.pallas_call(
        dqn_kernel,
        out_shape=jax.ShapeDtypeStruct((B, n_out), jnp.bfloat16),
        grid=grid,
        in_specs=[
            pl.BlockSpec((tb, in_dim), lambda i: (i, 0)),   # x: batch-tiled
            pl.BlockSpec((in_dim, fc1), full),              # w1
            pl.BlockSpec((1, fc1), full),                   # b1
            pl.BlockSpec((fc1, fc2), full),                 # w2
            pl.BlockSpec((1, fc2), full),                   # b2
            pl.BlockSpec((fc2, n_out), full),               # w3 (lane-padded)
            pl.BlockSpec((1, n_out), full),                 # b3 (lane-padded)
        ],
        out_specs=pl.BlockSpec((tb, n_out), lambda i: (i, 0)),
        compiler_params=pltpu.CompilerParams(
            dimension_semantics=("parallel",),              # shard batch tiles across TCs
            vmem_limit_bytes=vmem_limit,
        ),
        cost_estimate=pl.CostEstimate(
            flops=flops, transcendentals=0, bytes_accessed=bytes_accessed),
    )(state, prep["w1"], prep["b1"], prep["w2"], prep["b2"], prep["w3"], prep["b3"])

    return out[:, :n_actions].astype(jnp.float32)


def init_params(key, in_dim, fc1_dims, fc2_dims, n_actions):
    """Deterministic init mimicking nn.Linear's U(-1/sqrt(fan_in), 1/sqrt(fan_in)).

    Weights are stored transposed: (fan_in, fan_out), f32 master copies.
    """
    ks = jax.random.split(key, 6)

    def lin(kw, kb, fan_in, fan_out):
        bound = 1.0 / jnp.sqrt(fan_in)
        w = jax.random.uniform(kw, (fan_in, fan_out), jnp.float32, -bound, bound)
        b = jax.random.uniform(kb, (fan_out,), jnp.float32, -bound, bound)
        return w, b

    w1, b1 = lin(ks[0], ks[1], in_dim, fc1_dims)
    w2, b2 = lin(ks[2], ks[3], fc1_dims, fc2_dims)
    w3, b3 = lin(ks[4], ks[5], fc2_dims, n_actions)
    return {"w1": w1, "b1": b1, "w2": w2, "b2": b2, "w3": w3, "b3": b3}


if __name__ == "__main__":
    # Small shapes consistent with DeepQNetwork(lr, input_dims=(16,), fc1_dims=32,
    # fc2_dims=32, n_actions=4), batch=2.
    # TODO(synk): the Adam optimizer, MSELoss and .to(device) placement in the
    # PyTorch module are training/host concerns, not part of the forward kernel.
    batch, in_dim, fc1_dims, fc2_dims, n_actions = 2, 16, 32, 32, 4

    key = jax.random.PRNGKey(0)
    k_params, k_state = jax.random.split(key)
    params = init_params(k_params, in_dim, fc1_dims, fc2_dims, n_actions)

    # One-time parameter prep, reused across every forward call.
    prep, n_act = prepare_params(params)

    def ref_forward(x):  # pure-JAX f32 reference (same semantics as torch forward)
        h = jnp.maximum(x @ params["w1"] + params["b1"], 0.0)
        h = jnp.maximum(h @ params["w2"] + params["b2"], 0.0)
        return h @ params["w3"] + params["b3"]

    state = jax.random.normal(k_state, (batch, in_dim), jnp.float32)
    actions = dqn_forward(state, prep, n_actions=n_act)
    jax.block_until_ready(actions)
    assert actions.shape == (batch, n_actions)
    assert jnp.allclose(actions, ref_forward(state), atol=2e-2, rtol=2e-2), \
        "mismatch vs JAX reference"

    # Batch that is not a multiple of the tile size (ragged trailing block) and
    # large enough to exercise the >=2-step grid (2-TC sharding on v7x).
    big_state = jax.random.normal(jax.random.PRNGKey(1), (37, in_dim), jnp.float32)
    big_out = dqn_forward(big_state, prep, n_actions=n_act)
    jax.block_until_ready(big_out)
    assert big_out.shape == (37, n_actions)
    assert jnp.allclose(big_out, ref_forward(big_state), atol=2e-2, rtol=2e-2), \
        "mismatch (batch=37)"

    print("KERNEL_OK")
</pallas_src>

<mosaic_0001>
module attributes {stable_mosaic.version = 11 : i64} {
  func.func @dqn_kernel(%arg0: i32, %arg1: memref<8x16xf32, #tpu.memory_space<vmem>>, %arg2: memref<16x32xbf16, #tpu.memory_space<vmem>>, %arg3: memref<1x32xf32, #tpu.memory_space<vmem>>, %arg4: memref<32x32xbf16, #tpu.memory_space<vmem>>, %arg5: memref<1x32xf32, #tpu.memory_space<vmem>>, %arg6: memref<32x128xbf16, #tpu.memory_space<vmem>>, %arg7: memref<1x128xf32, #tpu.memory_space<vmem>>, %arg8: memref<8x128xbf16, #tpu.memory_space<vmem>>) attributes {dimension_semantics = [#tpu.dimension_semantics<parallel>], iteration_bounds = array<i64: 1>, scalar_prefetch = 0 : i64, scratch_operands = 0 : i64, tpu.core_type = #tpu.core_type<tc>, window_params = [{transform_indices = @transform_0, window_bounds = array<i64: 8, 16>}, {pipeline_mode = #tpu.pipeline_mode<synchronous>, transform_indices = @transform_1, window_bounds = array<i64: 16, 32>}, {pipeline_mode = #tpu.pipeline_mode<synchronous>, transform_indices = @transform_2, window_bounds = array<i64: 1, 32>}, {pipeline_mode = #tpu.pipeline_mode<synchronous>, transform_indices = @transform_3, window_bounds = array<i64: 32, 32>}, {pipeline_mode = #tpu.pipeline_mode<synchronous>, transform_indices = @transform_4, window_bounds = array<i64: 1, 32>}, {pipeline_mode = #tpu.pipeline_mode<synchronous>, transform_indices = @transform_5, window_bounds = array<i64: 32, 128>}, {pipeline_mode = #tpu.pipeline_mode<synchronous>, transform_indices = @transform_6, window_bounds = array<i64: 1, 128>}, {transform_indices = @transform_7, window_bounds = array<i64: 8, 128>}]} {
    %c0 = arith.constant 0 : index
    %c0_0 = arith.constant 0 : index
    %0 = vector.load %arg1[%c0, %c0_0] : memref<8x16xf32, #tpu.memory_space<vmem>>, vector<8x16xf32>
    %1 = arith.truncf %0 : vector<8x16xf32> to vector<8x16xbf16>
    %c0_1 = arith.constant 0 : index
    %c0_2 = arith.constant 0 : index
    %2 = vector.load %arg2[%c0_1, %c0_2] : memref<16x32xbf16, #tpu.memory_space<vmem>>, vector<16x32xbf16>
    %cst = arith.constant dense<0.000000e+00> : vector<8x32xf32>
    %3 = tpu.matmul %1, %2, %cst {dimension_numbers = #tpu.dot_dimension_numbers<[1], [0], [0], [1], [0, 0, 1, 1], [], []>} : vector<8x16xbf16>, vector<16x32xbf16>, vector<8x32xf32> -> vector<8x32xf32>
    %c0_3 = arith.constant 0 : index
    %c0_4 = arith.constant 0 : index
    %4 = vector.load %arg3[%c0_3, %c0_4] : memref<1x32xf32, #tpu.memory_space<vmem>>, vector<1x32xf32>
    %5 = vector.broadcast %4 : vector<1x32xf32> to vector<8x32xf32>
    %6 = arith.addf %3, %5 : vector<8x32xf32>
    %cst_5 = arith.constant 0.000000e+00 : f32
    %7 = vector.broadcast %cst_5 : f32 to vector<8x32xf32>
    %8 = arith.maximumf %6, %7 : vector<8x32xf32>
    %9 = arith.truncf %8 : vector<8x32xf32> to vector<8x32xbf16>
    %c0_6 = arith.constant 0 : index
    %c0_7 = arith.constant 0 : index
    %10 = vector.load %arg4[%c0_6, %c0_7] : memref<32x32xbf16, #tpu.memory_space<vmem>>, vector<32x32xbf16>
    %cst_8 = arith.constant dense<0.000000e+00> : vector<8x32xf32>
    %11 = tpu.matmul %9, %10, %cst_8 {dimension_numbers = #tpu.dot_dimension_numbers<[1], [0], [0], [1], [0, 0, 1, 1], [], []>} : vector<8x32xbf16>, vector<32x32xbf16>, vector<8x32xf32> -> vector<8x32xf32>
    %c0_9 = arith.constant 0 : index
    %c0_10 = arith.constant 0 : index
    %12 = vector.load %arg5[%c0_9, %c0_10] : memref<1x32xf32, #tpu.memory_space<vmem>>, vector<1x32xf32>
    %13 = vector.broadcast %12 : vector<1x32xf32> to vector<8x32xf32>
    %14 = arith.addf %11, %13 : vector<8x32xf32>
    %cst_11 = arith.constant 0.000000e+00 : f32
    %15 = vector.broadcast %cst_11 : f32 to vector<8x32xf32>
    %16 = arith.maximumf %14, %15 : vector<8x32xf32>
    %17 = arith.truncf %16 : vector<8x32xf32> to vector<8x32xbf16>
    %c0_12 = arith.constant 0 : index
    %c0_13 = arith.constant 0 : index
    %18 = vector.load %arg6[%c0_12, %c0_13] : memref<32x128xbf16, #tpu.memory_space<vmem>>, vector<32x128xbf16>
    %cst_14 = arith.constant dense<0.000000e+00> : vector<8x128xf32>
    %19 = tpu.matmul %17, %18, %cst_14 {dimension_numbers = #tpu.dot_dimension_numbers<[1], [0], [0], [1], [0, 0, 1, 1], [], []>} : vector<8x32xbf16>, vector<32x128xbf16>, vector<8x128xf32> -> vector<8x128xf32>
    %c0_15 = arith.constant 0 : index
    %c0_16 = arith.constant 0 : index
    %20 = vector.load %arg7[%c0_15, %c0_16] : memref<1x128xf32, #tpu.memory_space<vmem>>, vector<1x128xf32>
    %21 = vector.broadcast %20 : vector<1x128xf32> to vector<8x128xf32>
    %22 = arith.addf %19, %21 : vector<8x128xf32>
    %23 = arith.truncf %22 : vector<8x128xf32> to vector<8x128xbf16>
    %c0_17 = arith.constant 0 : index
    %c0_18 = arith.constant 0 : index
    %24 = vector.load %arg8[%c0_17, %c0_18] : memref<8x128xbf16, #tpu.memory_space<vmem>>, vector<8x128xbf16>
    tpu.vector_store %arg8[%c0_17, %c0_18], %23 {strides = array<i32>} : memref<8x128xbf16, #tpu.memory_space<vmem>>, vector<8x128xbf16>,
    return
  }
  func.func @transform_0(%arg0: i32) -> (i32, i32) {
    %c0_i32 = arith.constant 0 : i32
    %c0_i32_0 = arith.constant 0 : i32
    return %arg0, %c0_i32 : i32, i32
  }
  func.func @transform_1(%arg0: i32) -> (i32, i32) {
    %c0_i32 = arith.constant 0 : i32
    %c0_i32_0 = arith.constant 0 : i32
    %c0_i32_1 = arith.constant 0 : i32
    return %c0_i32, %c0_i32_0 : i32, i32
  }
  func.func @transform_2(%arg0: i32) -> (i32, i32) {
    %c0_i32 = arith.constant 0 : i32
    %c0_i32_0 = arith.constant 0 : i32
    %c0_i32_1 = arith.constant 0 : i32
    return %c0_i32, %c0_i32_0 : i32, i32
  }
  func.func @transform_3(%arg0: i32) -> (i32, i32) {
    %c0_i32 = arith.constant 0 : i32
    %c0_i32_0 = arith.constant 0 : i32
    %c0_i32_1 = arith.constant 0 : i32
    return %c0_i32, %c0_i32_0 : i32, i32
  }
  func.func @transform_4(%arg0: i32) -> (i32, i32) {
    %c0_i32 = arith.constant 0 : i32
    %c0_i32_0 = arith.constant 0 : i32
    %c0_i32_1 = arith.constant 0 : i32
    return %c0_i32, %c0_i32_0 : i32, i32
  }
  func.func @transform_5(%arg0: i32) -> (i32, i32) {
    %c0_i32 = arith.constant 0 : i32
    %c0_i32_0 = arith.constant 0 : i32
    %c0_i32_1 = arith.constant 0 : i32
    return %c0_i32, %c0_i32_0 : i32, i32
  }
  func.func @transform_6(%arg0: i32) -> (i32, i32) {
    %c0_i32 = arith.constant 0 : i32
    %c0_i32_0 = arith.constant 0 : i32
    %c0_i32_1 = arith.constant 0 : i32
    return %c0_i32, %c0_i32_0 : i32, i32
  }
  func.func @transform_7(%arg0: i32) -> (i32, i32) {
    %c0_i32 = arith.constant 0 : i32
    %c0_i32_0 = arith.constant 0 : i32
    return %arg0, %c0_i32 : i32, i32
  }
}

</mosaic_0001>

<bundles_post_ra>
// kernel: dqn_forward.1
= control target key start
LH: loop header
LB: loop body
LE: loop exit
PB: predicated region body
PF: predicated region fallthrough
CT: control target
= control target key end

     0   :  { %12 = vsyncpa [#allocation3], 0  ;;  %s627_s0 = inlined_call_operand.hbm [shape: f32[2,16], index: 0, kind: input, shape index: {}]   ;;  %s628_s1 = inlined_call_operand.hbm [shape: bf16[16,32], index: 1, kind: input, shape index: {}]   ;;  %s629_s2 = inlined_call_operand.vmem [shape: f32[1,32], index: 2, kind: input, shape index: {}]   ;;  %s630_s3 = inlined_call_operand.vmem [shape: bf16[32,32], index: 3, kind: input, shape index: {}]   ;;  %s631_s4 = inlined_call_operand.vmem [shape: f32[1,32], index: 4, kind: input, shape index: {}]   ;;  %s632_s5 = inlined_call_operand.hbm [shape: bf16[32,128], index: 5, kind: input, shape index: {}]   ;;  %s633_s6 = inlined_call_operand.hbm [shape: f32[1,128], index: 6, kind: input, shape index: {}]   ;;  %s634_s7 = inlined_call_operand.vmem [shape: bf16[2,128], index: 7, kind: output, shape index: {}]  }
   0x1   :  { %13 = vsyncpa [#allocation5], 0 }
   0x2   :  { %14 = vsyncpa [#allocation8], 0 }
   0x3   :  { %19 = vsyncadd [#allocation3], 96  ;;  %s507_s24 = smov [#allocation4]   ;;  %s413_s28 = scalar_lea.hbm %s628_s1, 128 }
   0x4   :  { %s32_s25 = sshll.u32 %s507_s24, 4  ;;  %p414_p0 = scmp.ne.s32.totalorder %s628_s1, %s413_s28  ;;  %s33_s25 = int_to_ptr.vmem [resolvable:$true] %s32_s25 }
   0x5   :  { %p417_p1 = scmp.lt.u32.totalorder %s413_s28, %s628_s1 }
   0x7   :  { %p419_p2 = pnand %p417_p1, %p414_p0 }
   0x9   :  { %422 = shalt.err (!%p419_p2)
}
   0xa   :  { %s423_s10 = scalar_lea.vmem %s33_s25, 128  ;;  %p428_p4 = scmp.lt.s32.totalorder %s33_s25, %s33_s25 }
   0xb   :  { %p424_p3 = scmp.ne.s32.totalorder %s33_s25, %s423_s10  ;;  %p429_p5 = scmp.lt.s32.totalorder %s423_s10, %s423_s10 }
   0xd   :  { %p430_p6 = por %p429_p5, %p428_p4 }
   0xf   :  { %p431_p7 = pnand %p430_p6, %p424_p3 }
  0x11   :  { %434 = shalt.err (!%p431_p7)
}
  0x12   :  { %s508_s11 = smov 64   ;;  %s509_s12 = smov 4  }
  0x13   :  { %38 = dma.hbm_to_vmem [thread:$0]  %s628_s1, 128, %s33_s25, [#allocation5], %s508_s11, %s508_s11, %s509_s12  }
  0x14   :  { %s510_s15 = smov [#allocation2]   ;;  %s435_s19 = scalar_lea.hbm %s627_s0, 32 }
  0x15   :  { %s20_s16 = sshll.u32 %s510_s15, 4  ;;  %p436_p8 = scmp.ne.s32.totalorder %s627_s0, %s435_s19  ;;  %s21_s16 = int_to_ptr.vmem [resolvable:$true] %s20_s16 }
  0x16   :  { %p439_p9 = scmp.lt.u32.totalorder %s435_s19, %s627_s0 }
  0x18   :  { %p441_p10 = pnand %p439_p9, %p436_p8 }
  0x1a   :  { %444 = shalt.err (!%p441_p10)
}
  0x1b   :  { %s445_s24 = scalar_lea.vmem %s21_s16, 32  ;;  %s449_s1 = scalar_lea.vmem %s21_s16, 128 }
  0x1c   :  { %p446_p11 = scmp.ne.s32.totalorder %s21_s16, %s445_s24  ;;  %p450_p12 = scmp.lt.s32.totalorder %s21_s16, %s21_s16 }
  0x1d   :  { %p451_p13 = scmp.lt.s32.totalorder %s449_s1, %s445_s24 }
  0x1f   :  { %p452_p0 = por %p451_p13, %p450_p12 }
  0x21   :  { %p453_p1 = pnand %p452_p0, %p446_p11 }
  0x23   :  { %456 = shalt.err (!%p453_p1)
}
  0x24   :  { %s511_s25 = smov 32   ;;  %s512_s26 = smov 2  }
  0x25   :  { %26 = dma.hbm_to_vmem [thread:$0]  %s627_s0, 32, %s21_s16, [#allocation3], %s511_s25, %s511_s25, %s512_s26  }
  0x26   :  { %s513_s29 = smov [#allocation6]   ;;  %s514_s8 = smov [#allocation7]  }
  0x27   :  { %s50_s30 = sshll.u32 %s513_s29, 4  ;;  %s63_s9 = sshll.u32 %s514_s8, 4  ;;  %s51_s30 = int_to_ptr.vmem [resolvable:$true] %s50_s30  ;;  %s64_s9 = int_to_ptr.vmem [resolvable:$true] %s63_s9 }
  0x28   :  { %s457_s14 = scalar_lea.hbm %s632_s5, 256 }
  0x29   :  { %p458_p2 = scmp.ne.s32.totalorder %s632_s5, %s457_s14  ;;  %p461_p3 = scmp.lt.u32.totalorder %s457_s14, %s632_s5 }
  0x2b   :  { %p463_p4 = pnand %p461_p3, %p458_p2 }
  0x2d   :  { %466 = shalt.err (!%p463_p4)
}
  0x2e   :  { %s467_s0 = scalar_lea.vmem %s51_s30, 256  ;;  %p472_p6 = scmp.lt.s32.totalorder %s51_s30, %s51_s30 }
  0x2f   :  { %p468_p5 = scmp.ne.s32.totalorder %s51_s30, %s467_s0  ;;  %p473_p7 = scmp.lt.s32.totalorder %s467_s0, %s467_s0 }
  0x31   :  { %p474_p8 = por %p473_p7, %p472_p6 }
  0x33   :  { %p475_p9 = pnand %p474_p8, %p468_p5 }
  0x35   :  { %478 = shalt.err (!%p475_p9)
}
  0x36   :  { %56 = dma.hbm_to_vmem [thread:$0]  %s632_s5, 256, %s51_s30, [#allocation5], %s508_s11, %s508_s11, %s509_s12  }
  0x37   :  { %s479_s23 = scalar_lea.hbm %s633_s6, 16 }
  0x38   :  { %p480_p10 = scmp.ne.s32.totalorder %s633_s6, %s479_s23  ;;  %p483_p11 = scmp.lt.u32.totalorder %s479_s23, %s633_s6 }
  0x3a   :  { %p485_p12 = pnand %p483_p11, %p480_p10 }
  0x3c   :  { %488 = shalt.err (!%p485_p12)
}
  0x3d   :  { %s489_s27 = scalar_lea.vmem %s64_s9, 16  ;;  %s493_s28 = scalar_lea.vmem %s64_s9, 32 }
  0x3e   :  { %p490_p13 = scmp.ne.s32.totalorder %s64_s9, %s489_s27  ;;  %p494_p0 = scmp.lt.s32.totalorder %s64_s9, %s64_s9 }
  0x3f   :  { %p495_p1 = scmp.lt.s32.totalorder %s493_s28, %s489_s27 }
  0x41   :  { %p496_p2 = por %p495_p1, %p494_p0 }
  0x43   :  { %p497_p3 = pnand %p496_p2, %p490_p13 }
  0x45   :  { %500 = shalt.err (!%p497_p3)
}
  0x46   :  { %66 = dma.hbm_to_vmem [thread:$0]  %s633_s6, 16, %s64_s9, [#allocation8]  }
  0x47   :  { %501 = dma.done.wait [#allocation3], 128  }
  0x48   :  { %502 = vsyncadd [#allocation3], 4294967168 }
  0x49   :  { %503 = dma.done.wait [#allocation5], 384  }
  0x4a   :  { %504 = vsyncadd [#allocation5], 4294966912 }
  0x4b   :  { %505 = dma.done.wait [#allocation8], 16  }
  0x4c   :  { %506 = vsyncadd [#allocation8], 4294967280  ;;  %v515_v0 = vmov 0.0   ;;  %vm516_vm0 = vmmov 0   ;;  %v408_v1 = vld [vmem:[#allocation4] sm:$0xff]   ;;  %v80_v2 = vld [vmem:[#allocation2] sm:$0xff]  ;;  %v283_v26 = vlaneseq }
  0x4d   :  { %375 = vmatprep.subr.bf16.mxu0 %v515_v0  ;;  %377 = vmatprep.mubr.msk.bf16.mxu0 %vm516_vm0, %v515_v0  ;;  %vm97_vm1 = vcmask 130048   ;;  %v81_v3 = vpack.c.bf16 %v80_v2, %v80_v2  ;;  %v409_v4 = vld [vmem:[%s630_s3] sm:$0xff]   ;;  %v410_v5 = vld [vmem:[%s630_s3 + $0x8] sm:$0xff]   ;;  %vm166_vm2 = vcmask 261120   ;;  %v517_v24 = vmov 1966171168  }
  0x4e   :  { %381 = vmatprep.subr.bf16.mxu1 %v515_v0  ;;  %385 = vmatprep.mubr.msk.bf16.mxu1 %vm516_vm0, %v515_v0  ;;  %v411_v6 = vld [vmem:[#allocation6] sm:$0xff]   ;;  %v412_v15 = vld [vmem:[#allocation6 + $0x8] sm:$0xff]   ;;  %v281_v25 = vunpack.c.l.s4 %v517_v24  ;;  %v284_v28 = vshrl.u32 %v283_v26, 7  ;;  %v361_v29 = vld [vmem:[#allocation7] ss:$0 sm:$0xff] }
  0x4f   :  { %376 = vmatpush3.bf16.msra.mxu0 %v408_v1  ;;  %382 = vmatpush3.bf16.msra.mxu1 %v409_v4  ;;  %v354_v7 = vld [vmem:[%s629_s2] ss:$0 sm:$0xff] }
  0x50   :  { %389 = vmatprep.subr.bf16.mxu0 %v515_v0  ;;  %383 = vmatprep.subr.bf16.mxu1 %v515_v0  ;;  %v357_v16 = vld [vmem:[%s631_s4] ss:$0 sm:$0xff]  ;;  %v282_v27 = vunpack.c.0.s8 %v281_v25 }
  0x52   :  { %378 = vmatmul.mubr.msk.bf16.vlgmr.msra.gmra.mrb[0].mxu0 %vm97_vm1, %v81_v3  ;;  %v285_v32 = vsub.s32 %v282_v27, %v284_v28 }
  0x53   :  { %393 = vmatprep.mubr.msk.bf16.mxu0 %vm516_vm0, %v515_v0  ;;  %384 = vmatpush3.bf16.msra.mxu1 %v410_v5 }
  0x54   :  { %390 = vmatpush3.bf16.msra.mxu0 %v411_v6 }
  0x55   :  { %391 = vmatprep.subr.bf16.mxu0 %v515_v0 }
  0x58   :  { %392 = vmatpush3.bf16.msra.mxu0 %v412_v15 }
 0x125   :  { %v135_v8 = vpop.f32.mrb[0].mxu0 }
 0x126   :  { %v136_v9 = vadd.f32 %v354_v7, %v135_v8  ;;  %v379_v10 = vpop.f32.mrb[1].mxu0 }
 0x127   :  { %v138_v11 = vpop.f32.mrb[2].mxu0 }
 0x128   :  { %v141_v12 = vmax.f32 %v136_v9, 0.0  ;;  %v380_v13 = vpop.f32.mrb[3].mxu0 }
 0x12a   :  { %v142_v14 = vpack.c.bf16 %v141_v12, %v141_v12 }
 0x12c   :  { %386 = vmatmul.mubr.msk.bf16.vlgmr.msra.gmra.mrb[0].mxu1 %vm166_vm2, %v142_v14 }
 0x1ff   :  { %v204_v17 = vpop.f32.mrb[0].mxu1 }
 0x200   :  { %v205_v18 = vadd.f32 %v357_v16, %v204_v17  ;;  %v387_v19 = vpop.f32.mrb[1].mxu1 }
 0x201   :  { %v207_v20 = vpop.f32.mrb[2].mxu1 }
 0x202   :  { %v210_v21 = vmax.f32 %v205_v18, 0.0  ;;  %v388_v22 = vpop.f32.mrb[3].mxu1 }
 0x204   :  { %v211_v23 = vpack.c.bf16 %v210_v21, %v210_v21 }
 0x206   :  { %394 = vmatmul.mubr.msk.bf16.vlgmr.msra.gmra.mrb[4].mxu0 %vm166_vm2, %v211_v23 }
 0x2d9   :  { %v272_v30 = vpop.f32.mrb[4].mxu0 }
 0x2da   :  { %v273_v31 = vadd.f32 %v361_v29, %v272_v30  ;;  %v395_v33 = vpop.f32.mrb[5].mxu0 }
 0x2db   :  { %v275_v34 = vpop.f32.mrb[6].mxu0 }
 0x2dc   :  { %v278_v35 = vpack.c.bf16 %v273_v31, %v273_v31  ;;  %v396_v36 = vpop.f32.mrb[7].mxu0 }
 0x2de   :  { %v286_v37 = vrot.slane %v278_v35, %v285_v32 }
 0x2e0   :  { %365 = vst.sshfl [vmem:[#allocation9] sm:$0x1 pattern:$0x73625140] %v286_v37 }
 0x2e7   :  { %v329_v38 = vld [vmem:[#allocation9] sm:$0x1] }
 0x2e8   :  { %330 = vst [vmem:[%s634_s7] sm:$0x1] %v329_v38 }
 0x2e9   :  { %347 = vsyncpa [#allocation3], 1 }
 0x2ea   :  { %348 = vsyncpa [#allocation5], 1 }
 0x2eb   :  { %349 = vsyncpa [#allocation8], 1 }

</bundles_post_ra>
